<compile_context>
chip_gen: v7x
topology: tpu7x:2x2x1
jax: 0.10.0
libtpu: 0.0.40
codegen_flags: <defaults>
</compile_context>

<pallas_src>
import jax
import jax.numpy as jnp
from jax.experimental import pallas as pl
from jax.experimental.pallas import tpu as pltpu


def _event_type_embed_kernel(ids_ref, tab_ref, out_ref, acc_ref):
    # Grid: (num_v_tiles,).  V is the (only) reduction axis.
    v = pl.program_id(0)
    nv = pl.num_programs(0)

    @pl.when(v == 0)
    def _():
        acc_ref[...] = jnp.zeros_like(acc_ref)

    B, L = ids_ref.shape
    TV = tab_ref.shape[0]
    base = v * TV

    ids = ids_ref[...]                                                  # [B, L] int32
    # Absolute vocab row ids covered by this tile.
    row_ids = jax.lax.broadcasted_iota(jnp.int32, (B, L, TV), 2) + base  # [B, L, TV]
    one_hot = (ids[:, :, None] == row_ids).astype(jnp.float32)           # [B, L, TV]
    counts = jnp.sum(one_hot, axis=1)                                    # [B, TV]

    # Embedding lookup + sum over L as a [B, TV] x [TV, E] MXU matmul.
    acc_ref[...] += jnp.dot(
        counts,
        tab_ref[...].astype(jnp.float32),
        preferred_element_type=jnp.float32,
    )

    @pl.when(v == nv - 1)
    def _():
        inv_n = jnp.float32(1.0 / L)
        out_ref[...] = (acc_ref[...] * inv_n)[:, None, :].astype(out_ref.dtype)


def _pick_v_tile(V, E, itemsize, budget_bytes):
    """Largest V tile that fits the VMEM budget (full V if the table fits)."""
    if V * E * itemsize <= budget_bytes:
        return V
    max_rows = max(8, budget_bytes // (E * itemsize))
    tv = (max_rows // 8) * 8
    while tv >= 8:
        if V % tv == 0:
            return tv
        tv -= 8
    # No clean divisor found; fall back to the fully-resident table.
    return V


def event_type_embedding(event_type_ids, embedding_table,
                         *, vmem_table_budget_bytes=8 * 1024 * 1024):
    """event_type_ids: [B, L] int, embedding_table: [V, E] -> [B, 1, E]."""
    B, L = event_type_ids.shape
    V, E = embedding_table.shape
    out_dtype = embedding_table.dtype

    tv = _pick_v_tile(V, E, jnp.dtype(embedding_table.dtype).itemsize,
                      vmem_table_budget_bytes)
    num_v_tiles = V // tv if V % tv == 0 else 1
    if num_v_tiles == 1:
        tv = V

    grid_spec = pltpu.PrefetchScalarGridSpec(
        num_scalar_prefetch=0,
        grid=(num_v_tiles,),
        in_specs=[
            # Indices: whole [B, L] array resident in VMEM every step.
            pl.BlockSpec((B, L), lambda v: (0, 0)),
            # Embedding table: one (tv, E) streaming tile per step.
            pl.BlockSpec((tv, E), lambda v: (v, 0)),
        ],
        out_specs=pl.BlockSpec((B, 1, E), lambda v: (0, 0, 0)),
        scratch_shapes=[pltpu.VMEM((B, E), jnp.float32)],
    )

    return pl.pallas_call(
        _event_type_embed_kernel,
        out_shape=jax.ShapeDtypeStruct((B, 1, E), out_dtype),
        grid_spec=grid_spec,
        compiler_params=pltpu.CompilerParams(
            dimension_semantics=("arbitrary",)  # V is a reduction axis
        ),
    )(event_type_ids.astype(jnp.int32), embedding_table)


if __name__ == "__main__":
    # Small shapes consistent with the module.
    B, L = 2, 8          # batch, sequence length (event-type tokens per example)
    V, E = 16, 128       # vocab size, embedding_size

    key = jax.random.PRNGKey(0)
    k_emb, k_ids = jax.random.split(key)

    # Deterministic synthetic "word_embeddings" weight (nn.Embedding(V, E)).
    embedding_table = jax.random.normal(k_emb, (V, E), dtype=jnp.float32)
    event_type_ids = jax.random.randint(k_ids, (B, L), 0, V, dtype=jnp.int32)

    out = event_type_embedding(event_type_ids, embedding_table)
    out = jax.block_until_ready(out)

    # Pure-JAX reference check (embedding lookup + mean over dim 1 + unsqueeze).
    ref = jnp.mean(embedding_table[event_type_ids], axis=1, keepdims=True)
    assert out.shape == (B, 1, E), out.shape
    assert jnp.allclose(out, ref, atol=1e-5, rtol=1e-5), "mismatch vs reference"

    print("KERNEL_OK")
</pallas_src>

<mosaic_0001>
module attributes {stable_mosaic.version = 11 : i64} {
  func.func @_event_type_embed_kernel(%arg0: i32, %arg1: memref<2x8xi32, #tpu.memory_space<vmem>>, %arg2: memref<16x128xf32, #tpu.memory_space<vmem>>, %arg3: memref<2x1x128xf32, #tpu.memory_space<vmem>>, %arg4: memref<2x128xf32, #tpu.memory_space<vmem>>) attributes {dimension_semantics = [#tpu.dimension_semantics<arbitrary>], iteration_bounds = array<i64: 1>, scalar_prefetch = 0 : i64, scratch_operands = 1 : i64, tpu.core_type = #tpu.core_type<tc>, window_params = [{pipeline_mode = #tpu.pipeline_mode<synchronous>, transform_indices = @transform_0, window_bounds = array<i64: 2, 8>}, {transform_indices = @transform_1, window_bounds = array<i64: 16, 128>}, {pipeline_mode = #tpu.pipeline_mode<synchronous>, transform_indices = @transform_2, window_bounds = array<i64: 2, 1, 128>}]} {
    %c0_i32 = arith.constant 0 : i32
    %0 = arith.cmpi eq, %arg0, %c0_i32 : i32
    %1 = arith.extui %0 : i1 to i32
    %c0_i32_0 = arith.constant 0 : i32
    %2 = arith.cmpi ne, %1, %c0_i32_0 : i32
    scf.if %2 {
      %cst_11 = arith.constant 0.000000e+00 : f32
      %22 = vector.broadcast %cst_11 : f32 to vector<2x128xf32>
      %c0_12 = arith.constant 0 : index
      %c0_13 = arith.constant 0 : index
      %23 = vector.load %arg4[%c0_12, %c0_13] : memref<2x128xf32, #tpu.memory_space<vmem>>, vector<2x128xf32>
      tpu.vector_store %arg4[%c0_12, %c0_13], %22 {strides = array<i32>} : memref<2x128xf32, #tpu.memory_space<vmem>>, vector<2x128xf32>,
    } else {
    }
    %c16_i32 = arith.constant 16 : i32
    %3 = arith.muli %arg0, %c16_i32 : i32
    %c0 = arith.constant 0 : index
    %c0_1 = arith.constant 0 : index
    %4 = vector.load %arg1[%c0, %c0_1] : memref<2x8xi32, #tpu.memory_space<vmem>>, vector<2x8xi32>
    %5 = tpu.iota {dimensions = array<i32: 2>} : vector<2x8x16xi32>
    %6 = vector.broadcast %3 : i32 to vector<2x8x16xi32>
    %7 = arith.addi %5, %6 : vector<2x8x16xi32>
    %8 = vector.shape_cast %4 : vector<2x8xi32> to vector<2x8x1xi32>
    %9 = vector.broadcast %8 : vector<2x8x1xi32> to vector<2x8x16xi32>
    %10 = arith.cmpi eq, %9, %7 : vector<2x8x16xi32>
    %11 = arith.extui %10 : vector<2x8x16xi1> to vector<2x8x16xi32>
    %12 = arith.sitofp %11 : vector<2x8x16xi32> to vector<2x8x16xf32>
    %cst = arith.constant dense<0.000000e+00> : vector<2x16xf32>
    %13 = vector.multi_reduction <add>, %12, %cst [1] : vector<2x8x16xf32> to vector<2x16xf32>
    %c0_2 = arith.constant 0 : index
    %c0_3 = arith.constant 0 : index
    %14 = vector.load %arg4[%c0_2, %c0_3] : memref<2x128xf32, #tpu.memory_space<vmem>>, vector<2x128xf32>
    %c0_4 = arith.constant 0 : index
    %c0_5 = arith.constant 0 : index
    %15 = vector.load %arg2[%c0_4, %c0_5] : memref<16x128xf32, #tpu.memory_space<vmem>>, vector<16x128xf32>
    %cst_6 = arith.constant dense<0.000000e+00> : vector<2x128xf32>
    %16 = tpu.matmul %13, %15, %cst_6 {dimension_numbers = #tpu.dot_dimension_numbers<[1], [0], [0], [1], [0, 0, 1, 1], [], []>} : vector<2x16xf32>, vector<16x128xf32>, vector<2x128xf32> -> vector<2x128xf32>
    %17 = arith.addf %14, %16 : vector<2x128xf32>
    %c0_7 = arith.constant 0 : index
    %c0_8 = arith.constant 0 : index
    %18 = vector.load %arg4[%c0_7, %c0_8] : memref<2x128xf32, #tpu.memory_space<vmem>>, vector<2x128xf32>
    tpu.vector_store %arg4[%c0_7, %c0_8], %17 {strides = array<i32>} : memref<2x128xf32, #tpu.memory_space<vmem>>, vector<2x128xf32>,
    %c0_i32_9 = arith.constant 0 : i32
    %19 = arith.cmpi eq, %arg0, %c0_i32_9 : i32
    %20 = arith.extui %19 : i1 to i32
    %c0_i32_10 = arith.constant 0 : i32
    %21 = arith.cmpi ne, %20, %c0_i32_10 : i32
    scf.if %21 {
      %c0_11 = arith.constant 0 : index
      %c0_12 = arith.constant 0 : index
      %22 = vector.load %arg4[%c0_11, %c0_12] : memref<2x128xf32, #tpu.memory_space<vmem>>, vector<2x128xf32>
      %cst_13 = arith.constant 1.250000e-01 : f32
      %23 = vector.broadcast %cst_13 : f32 to vector<2x128xf32>
      %24 = arith.mulf %22, %23 : vector<2x128xf32>
      %25 = vector.shape_cast %24 : vector<2x128xf32> to vector<2x1x128xf32>
      %c0_14 = arith.constant 0 : index
      %c0_15 = arith.constant 0 : index
      %c0_16 = arith.constant 0 : index
      %26 = vector.load %arg3[%c0_14, %c0_15, %c0_16] : memref<2x1x128xf32, #tpu.memory_space<vmem>>, vector<2x1x128xf32>
      tpu.vector_store %arg3[%c0_14, %c0_15, %c0_16], %25 {strides = array<i32>} : memref<2x1x128xf32, #tpu.memory_space<vmem>>, vector<2x1x128xf32>,
    } else {
    }
    return
  }
  func.func @transform_0(%arg0: i32) -> (i32, i32) {
    %c0_i32 = arith.constant 0 : i32
    %c0_i32_0 = arith.constant 0 : i32
    %c0_i32_1 = arith.constant 0 : i32
    return %c0_i32, %c0_i32_0 : i32, i32
  }
  func.func @transform_1(%arg0: i32) -> (i32, i32) {
    %c0_i32 = arith.constant 0 : i32
    %c0_i32_0 = arith.constant 0 : i32
    return %arg0, %c0_i32 : i32, i32
  }
  func.func @transform_2(%arg0: i32) -> (i32, i32, i32) {
    %c0_i32 = arith.constant 0 : i32
    %c0_i32_0 = arith.constant 0 : i32
    %c0_i32_1 = arith.constant 0 : i32
    %c0_i32_2 = arith.constant 0 : i32
    return %c0_i32, %c0_i32_0, %c0_i32_1 : i32, i32, i32
  }
}

</mosaic_0001>

<bundles_post_ra>
// kernel: tpu_custom_call.1
= control target key start
LH: loop header
LB: loop body
LE: loop exit
PB: predicated region body
PF: predicated region fallthrough
CT: control target
= control target key end

     0   :  { %7 = vsyncpa [#allocation4], 0  ;;  %s388_s0 = inlined_call_operand.hbm [shape: s32[2,8], index: 0, kind: input, shape index: {}]   ;;  %s389_s1 = inlined_call_operand.hbm [shape: f32[16,128], index: 1, kind: input, shape index: {}]   ;;  %s390_s2 = inlined_call_operand.hbm [shape: f32[2,1,128], index: 2, kind: output, shape index: {}]  }
   0x1   :  { %8 = vsyncpa [#allocation7], 0 }
   0x2   :  { %9 = vsyncpa [#allocation5], 0  ;;  %s316_s9 = smov [#allocation3]   ;;  %s317_s11 = smov [#allocation6]  }
   0x3   :  { %s16_s10 = sshll.u32 %s316_s9, 4  ;;  %s25_s12 = sshll.u32 %s317_s11, 4  ;;  %s17_s10 = int_to_ptr.vmem [resolvable:$true] %s16_s10  ;;  %s342_s12 = int_to_ptr.vmem [resolvable:$true] %s25_s12 }
   0x4   :  { %s244_s15 = scalar_lea.hbm %s388_s0, 32 }
   0x5   :  { %p245_p0 = scmp.ne.s32.totalorder %s388_s0, %s244_s15  ;;  %p248_p1 = scmp.lt.u32.totalorder %s244_s15, %s388_s0 }
   0x7   :  { %p250_p2 = pnand %p248_p1, %p245_p0 }
   0x9   :  { %253 = shalt.err (!%p250_p2)
}
   0xa   :  { %s254_s20 = scalar_lea.vmem %s17_s10, 32  ;;  %p259_p4 = scmp.lt.s32.totalorder %s17_s10, %s17_s10 }
   0xb   :  { %p255_p3 = scmp.ne.s32.totalorder %s17_s10, %s254_s20  ;;  %p260_p5 = scmp.lt.s32.totalorder %s254_s20, %s254_s20 }
   0xd   :  { %p261_p6 = por %p260_p5, %p259_p4 }
   0xf   :  { %p262_p7 = pnand %p261_p6, %p255_p3 }
  0x11   :  { %265 = shalt.err (!%p262_p7)
}
  0x12   :  { %19 = dma.hbm_to_vmem [thread:$0]  %s388_s0, 32, %s17_s10, [#allocation4]  }
  0x13   :  { %s266_s25 = scalar_lea.hbm %s389_s1, 256 }
  0x14   :  { %p267_p8 = scmp.ne.s32.totalorder %s389_s1, %s266_s25  ;;  %p270_p9 = scmp.lt.u32.totalorder %s266_s25, %s389_s1 }
  0x16   :  { %p272_p10 = pnand %p270_p9, %p267_p8 }
  0x18   :  { %275 = shalt.err (!%p272_p10)
}
  0x19   :  { %s276_s30 = scalar_lea.vmem %s342_s12, 256  ;;  %p281_p12 = scmp.lt.s32.totalorder %s342_s12, %s342_s12 }
  0x1a   :  { %p277_p11 = scmp.ne.s32.totalorder %s342_s12, %s276_s30  ;;  %p282_p13 = scmp.lt.s32.totalorder %s276_s30, %s276_s30 }
  0x1c   :  { %p283_p0 = por %p282_p13, %p281_p12 }
  0x1e   :  { %p284_p1 = pnand %p283_p0, %p277_p11 }
  0x20   :  { %287 = shalt.err (!%p284_p1)
}
  0x21   :  { %s318_s0 = smov 128   ;;  %s319_s3 = smov 8  }
  0x22   :  { %31 = dma.hbm_to_vmem [thread:$0]  %s389_s1, 256, %s342_s12, [#allocation7], %s318_s0, %s318_s0, %s319_s3  }
  0x23   :  { %310 = dma.done.wait [#allocation4], 32  }
  0x24   :  { %311 = vsyncadd [#allocation4], 4294967264 }
  0x25   :  { %312 = dma.done.wait [#allocation7], 256  }
  0x26   :  { %313 = vsyncadd [#allocation7], 4294967040  ;;  %v45_v0 = vlaneseq  ;;  %v320_v1 = vmov 0.0   ;;  %v44_v5 = vld [vmem:[#allocation3] sm:$0x3]  ;;  %v85_v8 = vld [vmem:[#allocation6] sm:$0xff] }
  0x27   :  { %42 = vst [vmem:[#allocation2] sm:$0x3] %v320_v1  ;;  %v86_v9 = vld [vmem:[#allocation6 + $0x8] sm:$0xff]  ;;  %v321_v11 = vmov 0.0|0.0   ;;  %vm322_vm0 = vmmov 0   ;;  %vm69_vm1 = vcmask 130048  }
  0x28   :  { %v50_v2 = vshrl.u32 %v45_v0, 7  ;;  %v231_v10 = vpack.c.bf16 %v86_v9, %v85_v8  ;;  %230 = vmatprep.subr.bf16.mxu0 %v321_v11  ;;  %227 = vmatprep.mubr.msk.f32.mxu0 %vm322_vm0, %v320_v1  ;;  %v46_v12 = vand.u32 127, %v45_v0  ;;  %vm89_vm4 = vcmask 1041409   ;;  %s324_s1 = smov [#allocation8]  }
  0x29   :  { %v323_v34 = vmov 1966171168   ;;  %s202_s6 = sshll.u32 %s324_s1, 4  ;;  %s203_s6 = int_to_ptr.vmem [resolvable:$true] %s202_s6 }
  0x2a   :  { %v51_v3 = vsub.s32 0, %v50_v2  ;;  %v58_v4 = vsub.s32 1, %v50_v2  ;;  %232 = vmatpush3.bf16.msra.mxu0 %v231_v10  ;;  %v172_v35 = vunpack.c.l.s4 %v323_v34  ;;  %s288_s7 = scalar_lea.vmem %s203_s6, 32  ;;  %p293_p3 = scmp.lt.s32.totalorder %s203_s6, %s203_s6 }
  0x2b   :  { %p289_p2 = scmp.ne.s32.totalorder %s203_s6, %s288_s7  ;;  %p294_p4 = scmp.lt.s32.totalorder %s288_s7, %s288_s7 }
  0x2c   :  { %v52_v6 = vrot.slane %v44_v5, %v51_v3  ;;  %v59_v7 = vrot.slane %v44_v5, %v58_v4  ;;  %v173_v38 = vunpack.c.0.s8 %v172_v35 }
  0x2d   :  { %p295_p5 = por %p294_p4, %p293_p3 }
  0x2e   :  { %54 = vbcast.lane.b32.xlu0 %v52_v6, 256  ;;  %v84_v32 = vld [vmem:[#allocation2] sm:$0x3]  ;;  %v176_v39 = vsub.s32 %v173_v38, %v50_v2 }
  0x2f   :  { %p296_p6 = pnand %p295_p5, %p289_p2 }
  0x32   :  { %61 = vbcast.lane.b32.xlu0 %v59_v7, 256 }
  0xa0   :  { %v55_v13 = vpop.permute.xlu0 %54 }
  0xa1   :  { %vm63_vm2 = vcmp.eq.s32.totalorder %v55_v13, %v46_v12 }
  0xa2   :  { %v215_v14 = vsel %vm63_vm2, 1.0, %v320_v1 }
  0xa3   :  { %v70_v15 = vsel %vm69_vm1, %v215_v14, 0.0 }
  0xa4   :  { %v71_v16 = vrot.slane %v70_v15, 4  ;;  %v62_v17 = vpop.permute.xlu0 %61 }
  0xa5   :  { %vm64_vm3 = vcmp.eq.s32.totalorder %v62_v17, %v46_v12 }
  0xa6   :  { %v72_v18 = vadd.f32 %v71_v16, %v70_v15  ;;  %v216_v19 = vsel %vm64_vm3, 1.0, %v320_v1 }
  0xa7   :  { %v77_v20 = vsel %vm69_vm1, %v216_v19, 0.0 }
  0xa8   :  { %v73_v21 = vrot.slane %v72_v18, 2  ;;  %v78_v22 = vrot.slane %v77_v20, 4 }
  0xaa   :  { %v74_v23 = vadd.f32 %v73_v21, %v72_v18  ;;  %v79_v24 = vadd.f32 %v78_v22, %v77_v20 }
  0xac   :  { %v80_v25 = vrot.slane %v79_v24, 2  ;;  %v75_v26 = vrot.slane %v74_v23, 1 }
  0xae   :  { %v81_v27 = vadd.f32 %v80_v25, %v79_v24  ;;  %v76_v29 = vadd.f32 %v75_v26, %v74_v23 }
  0xb0   :  { %v82_v28 = vrot.slane %v81_v27, 1 }
  0xb2   :  { %v83_v30 = vadd.f32 %v82_v28, %v81_v27 }
  0xb4   :  { %v90_v31 = vsel %vm89_vm4, %v83_v30, %v76_v29 }
  0xb5   :  { %228 = vmatmul.mubr.msk.f32.vlgmr.msra.gmra.mrb[0].mxu0 %vm69_vm1, %v90_v31 }
 0x188   :  { %v159_v33 = vpop.f32.mrb[0].mxu0 }
 0x189   :  { %v163_v36 = vadd.f32 %v159_v33, %v84_v32  ;;  %v229_v37 = vpop.f32.mrb[1].mxu0 }
 0x18b   :  { %164 = vst [vmem:[#allocation2] sm:$0x3] %v163_v36 }
 0x192   :  { %v168_v40 = vld [vmem:[#allocation2] sm:$0x3] }
 0x193   :  { %v169_v41 = vmul.f32 0.125, %v168_v40 }
 0x195   :  { %v177_v42 = vrot.slane %v169_v41, %v176_v39 }
 0x197   :  { %v178_v43 = vcombine.high %v177_v42, %v177_v42  ;;  %218 = vst.sshfl [vmem:[#allocation8] sm:$0x1 pattern:$0x73625140] %v177_v42 }
 0x199   :  { %219 = vst.sshfl [vmem:[#allocation8 + $0x1] sm:$0x1 pattern:$0x73625140] %v178_v43 }
 0x19a   :  { %299 = shalt.err (!%p296_p6)
}
 0x19b   :  { %s300_s10 = scalar_lea.hbm %s390_s2, 32 }
 0x19c   :  { %p301_p7 = scmp.ne.s32.totalorder %s390_s2, %s300_s10  ;;  %p304_p8 = scmp.lt.u32.totalorder %s300_s10, %s390_s2 }
 0x19e   :  { %p306_p9 = pnand %p304_p8, %p301_p7 }
 0x1a0   :  { %309 = shalt.err (!%p306_p9)
}
 0x1a1   :  { %s325_s15 = smov 16   ;;  %s326_s16 = smov 1  }
 0x1a2   :  { %208 = dma.vmem_to_hbm [thread:$0]  %s203_s6, 32, %s390_s2, [#allocation5], %s325_s15, %s325_s15, %s326_s16  }
 0x1a3   :  { %314 = dma.done.wait [#allocation5], 32  }
 0x1a4   :  { %315 = vsyncadd [#allocation5], 4294967264 }
 0x1a5   :  { %212 = vsyncpa [#allocation4], 1 }
 0x1a6   :  { %213 = vsyncpa [#allocation7], 1 }
 0x1a7   :  { %214 = vsyncpa [#allocation5], 1 }

</bundles_post_ra>
